<compile_context>
chip_gen: v7x
topology: tpu7x:2x2x1
jax: 0.10.0
libtpu: 0.0.40
codegen_flags: <defaults>
</compile_context>

<pallas_src>
import functools
import math

import jax
import jax.numpy as jnp
from jax.experimental import pallas as pl
from jax.experimental.pallas import tpu as pltpu

VMEM_LIMIT = 48 * 1024 * 1024     # fits v7x's 64 MiB physical VMEM; ample on v5e/v6e
LN_EPS = 1e-5
PATCH_K, PATCH_S, PATCH_P = 7, 4, 3


# ----------------------------------------------------------------------------
# helpers
# ----------------------------------------------------------------------------
def _cparams(*sem):
    return pltpu.CompilerParams(dimension_semantics=tuple(sem),
                                vmem_limit_bytes=VMEM_LIMIT)


def _round_up(x, m):
    return (x + m - 1) // m * m


def _m_tile(m, cap=512):
    """M tile (multiple of 8, preferring 128/256/512) plus padded M (pad instead of a
    single huge fallback block)."""
    if m <= cap:
        t = _round_up(m, 8)
        return t, t
    for t in (cap, 384, 256, 128):
        if m % t == 0:
            return t, m
    return cap, _round_up(m, cap)


def _pad_rows(x, m_pad):
    m = x.shape[0]
    if m_pad == m:
        return x
    pads = ((0, m_pad - m),) + tuple((0, 0) for _ in range(x.ndim - 1))
    return jnp.pad(x, pads)


def _attn_pad(t):
    if t <= 256:
        return _round_up(t, 8)
    return _round_up(t, 256)


def _gelu(x):
    # TODO(synk): PyTorch nn.GELU default is the exact erf GELU; tanh approximation used here.
    return 0.5 * x * (1.0 + jnp.tanh(0.7978845608028654 * (x + 0.044715 * x * x * x)))


def _layernorm(x, g, b):
    mu = jnp.mean(x, axis=-1, keepdims=True)
    var = jnp.mean(jnp.square(x - mu), axis=-1, keepdims=True)
    return (x - mu) * jax.lax.rsqrt(var + LN_EPS) * g + b


# ----------------------------------------------------------------------------
# kernels
# ----------------------------------------------------------------------------
def _embed_ln_kernel(c_ref, w_ref, b_ref, g_ref, beta_ref, o_ref):
    """Fused RGB+seg patch-embed conv (single im2col matmul) + bias + LayerNorm."""
    acc = jnp.dot(c_ref[...], w_ref[...], preferred_element_type=jnp.float32) + b_ref[...]
    o_ref[...] = _layernorm(acc, g_ref[...], beta_ref[...]).astype(o_ref.dtype)


def _ln_matmul_kernel(x_ref, g_ref, b_ref, w_ref, bias_ref, o_ref):
    """LayerNorm on the (tm, D) block fused with the bf16 QKV matmul (D x 3D)."""
    y = _layernorm(x_ref[...].astype(jnp.float32), g_ref[...], b_ref[...])
    acc = jnp.dot(y.astype(jnp.bfloat16), w_ref[...],
                  preferred_element_type=jnp.float32) + bias_ref[...]
    o_ref[...] = acc.astype(o_ref.dtype)


def _proj_mlp_kernel(res_ref, attn_ref, wo_ref, bo_ref, g_ref, b_ref,
                     w1_ref, b1_ref, w2_ref, b2_ref, o_ref):
    """attn@Wo + residual -> LN2 -> W1 + GELU -> W2 -> + residual, all on-chip."""
    res = res_ref[...].astype(jnp.float32)
    y0 = res + jnp.dot(attn_ref[...], wo_ref[...],
                       preferred_element_type=jnp.float32) + bo_ref[...]
    y1 = _layernorm(y0, g_ref[...], b_ref[...])
    h = jnp.dot(y1.astype(jnp.bfloat16), w1_ref[...],
                preferred_element_type=jnp.float32) + b1_ref[...]
    h = _gelu(h)
    out = y0 + jnp.dot(h.astype(jnp.bfloat16), w2_ref[...],
                       preferred_element_type=jnp.float32) + b2_ref[...]
    o_ref[...] = out.astype(o_ref.dtype)


def _flash_attn_kernel(q_ref, k_ref, v_ref, o_ref, m_sc, l_sc, acc_sc,
                       *, heads, dh, scale, tkv, t_actual, need_mask):
    """Flash-style attention.  q/k/v refs are (1, tile, D) column-views of the QKV slab;
    all heads are processed in one invocation (unrolled), online-softmax state per head
    lives in VMEM scratch, and the output block is a lane-dense (tq, D) slab."""
    kv = pl.program_id(2)

    @pl.when(kv == 0)
    def _():
        m_sc[...] = jnp.full(m_sc.shape, -jnp.inf, m_sc.dtype)
        l_sc[...] = jnp.zeros(l_sc.shape, l_sc.dtype)
        acc_sc[...] = jnp.zeros(acc_sc.shape, acc_sc.dtype)

    q_all = q_ref[0]                                    # (tq,  D) bf16
    k_all = k_ref[0]                                    # (tkv, D) bf16
    v_all = v_ref[0]                                    # (tkv, D) bf16

    kv_valid = None
    if need_mask:
        ids = kv * tkv + jax.lax.broadcasted_iota(jnp.int32, (1, k_all.shape[0]), 1)
        kv_valid = ids < t_actual                       # (1, tkv)

    for h in range(heads):                              # static unroll, heads=6
        lo, hi = h * dh, (h + 1) * dh
        q = q_all[:, lo:hi]
        k = k_all[:, lo:hi]
        v = v_all[:, lo:hi]
        s = jax.lax.dot_general(q, k, (((1,), (1,)), ((), ())),
                                preferred_element_type=jnp.float32) * scale
        if need_mask:
            s = jnp.where(kv_valid, s, -1e30)
        m_prev = m_sc[h]
        m_new = jnp.maximum(m_prev, jnp.max(s, axis=-1, keepdims=True))
        alpha = jnp.exp(m_prev - m_new)
        p = jnp.exp(s - m_new)
        l_sc[h] = alpha * l_sc[h] + jnp.sum(p, axis=-1, keepdims=True)
        acc_sc[h] = alpha * acc_sc[h] + jax.lax.dot_general(
            p.astype(v.dtype), v, (((1,), (0,)), ((), ())),
            preferred_element_type=jnp.float32)
        m_sc[h] = m_new

    @pl.when(kv == pl.num_programs(2) - 1)
    def _():
        outs = []
        for h in range(heads):
            inv = pl.reciprocal(l_sc[h], approx=True)
            outs.append((acc_sc[h] * inv).astype(o_ref.dtype))
        o_ref[0] = jnp.concatenate(outs, axis=-1)       # single lane-dense (tq, D) store


# ----------------------------------------------------------------------------
# wrappers (tiled pallas_calls)
# ----------------------------------------------------------------------------
def _im2col_nhwc(x_list, k, s, p, k_pad):
    """Channel-concat inputs, im2col to (N*Ho*Wo, k_pad) in bf16, NHWC slab order
    (K index = (i*k+j)*C + c).  No f32 (N,C,k*k,Ho,Wo) stack/transpose is materialized."""
    x = jnp.concatenate(x_list, axis=1)                       # (N, Ctot, H, W)
    n, c, hh, ww = x.shape
    x = jnp.transpose(x, (0, 2, 3, 1)).astype(jnp.bfloat16)   # small NHWC copy, bf16
    xp = jnp.pad(x, ((0, 0), (p, p), (p, p), (0, 0)))
    ho = (hh + 2 * p - k) // s + 1
    wo = (ww + 2 * p - k) // s + 1
    slabs = []
    for i in range(k):
        for j in range(k):
            slabs.append(xp[:, i: i + s * (ho - 1) + 1: s, j: j + s * (wo - 1) + 1: s, :])
    cols = jnp.concatenate(slabs, axis=-1)                    # (N, Ho, Wo, k*k*C) bf16
    kdim = k * k * c
    if k_pad > kdim:
        cols = jnp.pad(cols, ((0, 0), (0, 0), (0, 0), (0, k_pad - kdim)))
    return cols.reshape(n * ho * wo, k_pad), (ho, wo)


def embed_tokens(x_list, w, bias, ln_g, ln_b):
    """LN(fused_conv(x_list)) as tokens (N, Ho*Wo, D) in bf16."""
    n_img = x_list[0].shape[0]
    kpad, dim = w.shape
    cols, (ho, wo) = _im2col_nhwc(x_list, PATCH_K, PATCH_S, PATCH_P, kpad)
    m = cols.shape[0]
    tile, m_pad = _m_tile(m)
    cols = _pad_rows(cols, m_pad)
    out = pl.pallas_call(
        _embed_ln_kernel,
        out_shape=jax.ShapeDtypeStruct((m_pad, dim), jnp.bfloat16),
        grid=(m_pad // tile,),
        in_specs=[pl.BlockSpec((tile, kpad), lambda i: (i, 0)),
                  pl.BlockSpec((kpad, dim), lambda i: (0, 0)),
                  pl.BlockSpec((1, dim), lambda i: (0, 0)),
                  pl.BlockSpec((1, dim), lambda i: (0, 0)),
                  pl.BlockSpec((1, dim), lambda i: (0, 0))],
        out_specs=pl.BlockSpec((tile, dim), lambda i: (i, 0)),
        compiler_params=_cparams("parallel"),
    )(cols, w, bias, ln_g, ln_b)
    return out[:m].reshape(n_img, ho * wo, dim), (ho, wo)


def ln_matmul(x2d, g, b, w, bias, out_dtype=jnp.bfloat16):
    m, d = x2d.shape
    nout = w.shape[1]
    tile, m_pad = _m_tile(m)
    xq = _pad_rows(x2d, m_pad)
    out = pl.pallas_call(
        _ln_matmul_kernel,
        out_shape=jax.ShapeDtypeStruct((m_pad, nout), out_dtype),
        grid=(m_pad // tile,),
        in_specs=[pl.BlockSpec((tile, d), lambda i: (i, 0)),
                  pl.BlockSpec((1, d), lambda i: (0, 0)),
                  pl.BlockSpec((1, d), lambda i: (0, 0)),
                  pl.BlockSpec((d, nout), lambda i: (0, 0)),
                  pl.BlockSpec((1, nout), lambda i: (0, 0))],
        out_specs=pl.BlockSpec((tile, nout), lambda i: (i, 0)),
        compiler_params=_cparams("parallel"),
    )(xq, g, b, w, bias)
    return out[:m]


def fused_proj_mlp(res2d, attn2d, wo, bo, g, b, w1, b1, w2, b2, out_dtype=jnp.float32):
    m, d = res2d.shape
    dhid = w1.shape[1]
    tile, m_pad = _m_tile(m)
    res2d = _pad_rows(res2d, m_pad)
    attn2d = _pad_rows(attn2d, m_pad)
    out = pl.pallas_call(
        _proj_mlp_kernel,
        out_shape=jax.ShapeDtypeStruct((m_pad, d), out_dtype),
        grid=(m_pad // tile,),
        in_specs=[pl.BlockSpec((tile, d), lambda i: (i, 0)),
                  pl.BlockSpec((tile, d), lambda i: (i, 0)),
                  pl.BlockSpec((d, d), lambda i: (0, 0)),
                  pl.BlockSpec((1, d), lambda i: (0, 0)),
                  pl.BlockSpec((1, d), lambda i: (0, 0)),
                  pl.BlockSpec((1, d), lambda i: (0, 0)),
                  pl.BlockSpec((d, dhid), lambda i: (0, 0)),
                  pl.BlockSpec((1, dhid), lambda i: (0, 0)),
                  pl.BlockSpec((dhid, d), lambda i: (0, 0)),
                  pl.BlockSpec((1, d), lambda i: (0, 0))],
        out_specs=pl.BlockSpec((tile, d), lambda i: (i, 0)),
        compiler_params=_cparams("parallel"),
    )(res2d, attn2d, wo, bo, g, b, w1, b1, w2, b2)
    return out[:m]


def flash_attention(qkv3, heads, scale, t_actual):
    """qkv3: (N, T_pad, 3D) bf16.  Returns (N, T_pad, D) bf16.  The same slab is passed
    three times; BlockSpec index maps pick the q / k / v column blocks (no HBM relayout)."""
    n, t_pad, d3 = qkv3.shape
    d = d3 // 3
    dh = d // heads
    tq = tkv = min(256, t_pad)
    need_mask = t_pad != t_actual
    kernel = functools.partial(_flash_attn_kernel, heads=heads, dh=dh, scale=scale,
                               tkv=tkv, t_actual=t_actual, need_mask=need_mask)
    return pl.pallas_call(
        kernel,
        out_shape=jax.ShapeDtypeStruct((n, t_pad, d), jnp.bfloat16),
        grid=(n, t_pad // tq, t_pad // tkv),
        in_specs=[pl.BlockSpec((1, tq, d), lambda b, qi, ki: (b, qi, 0)),
                  pl.BlockSpec((1, tkv, d), lambda b, qi, ki: (b, ki, 1)),
                  pl.BlockSpec((1, tkv, d), lambda b, qi, ki: (b, ki, 2))],
        out_specs=pl.BlockSpec((1, tq, d), lambda b, qi, ki: (b, qi, 0)),
        scratch_shapes=[pltpu.VMEM((heads, tq, 1), jnp.float32),
                        pltpu.VMEM((heads, tq, 1), jnp.float32),
                        pltpu.VMEM((heads, tq, dh), jnp.float32)],
        compiler_params=_cparams("parallel", "parallel", "arbitrary"),
    )(qkv3, qkv3, qkv3)


# ----------------------------------------------------------------------------
# CvT/MixFormer-style body (representative stage)
# ----------------------------------------------------------------------------
def transformer_block(tokens, cp):
    n, t, d = tokens.shape
    heads = cp["heads"]
    x2 = tokens.reshape(n * t, d)                                     # bf16 stream

    qkv = ln_matmul(x2, cp["ln1_g"], cp["ln1_b"], cp["wqkv"], cp["bqkv"])   # (M, 3D) bf16
    qkv3 = qkv.reshape(n, t, 3 * d)
    t_pad = _attn_pad(t)
    if t_pad != t:
        qkv3 = jnp.pad(qkv3, ((0, 0), (0, t_pad - t), (0, 0)))
    attn = flash_attention(qkv3, heads, scale=1.0 / math.sqrt(d // heads), t_actual=t)
    attn2 = attn[:, :t].reshape(n * t, d)                             # bf16

    out = fused_proj_mlp(x2, attn2, cp["wo"], cp["bo"], cp["ln2_g"], cp["ln2_b"],
                         cp["w1"], cp["b1"], cp["w2"], cp["b2"])      # f32 final features
    return out.reshape(n, t, d)


def mixformer_body(template, dyn_template, search, template_seg, dyn_template_seg, cp):
    """Returns (zs, dzs, xs) NCHW feature maps with num_channels = 384 (stride-4 features)."""
    z, (hz, wz) = embed_tokens([template, template_seg], cp["emb_w"], cp["emb_b_full"],
                               cp["lne_g"], cp["lne_b"])
    dz, _ = embed_tokens([dyn_template, dyn_template_seg], cp["emb_w"], cp["emb_b_full"],
                         cp["lne_g"], cp["lne_b"])
    zero_seg = jnp.zeros(search[:, :1].shape, search.dtype)           # search has no seg map
    x, (hx, wx) = embed_tokens([search, zero_seg], cp["emb_w"], cp["emb_b_rgb"],
                               cp["lne_g"], cp["lne_b"])

    tz, tdz = z.shape[1], dz.shape[1]
    cat = jnp.concatenate([z, dz, x], axis=1)          # mixed attention over all tokens
    cat = transformer_block(cat, cp)
    z, dz, x = cat[:, :tz], cat[:, tz:tz + tdz], cat[:, tz + tdz:]

    def to_nchw(tok, h, w):
        nb, _, dd = tok.shape
        return tok.reshape(nb, h, w, dd).transpose(0, 3, 1, 2)

    return to_nchw(z, hz, wz), to_nchw(dz, hz, wz), to_nchw(x, hx, wx)


# ----------------------------------------------------------------------------
# mask nearest-neighbour interpolation (plain XLA gather — no Pallas launch needed)
# ----------------------------------------------------------------------------
def interp_mask_nearest(mask_bool, out_h, out_w):
    """Replicates F.interpolate(m[None].float(), size=(out_h, out_w)).to(bool)[0]."""
    _, hh, ww = mask_bool.shape
    idx_h = jnp.floor(jnp.arange(out_h) * (hh / out_h)).astype(jnp.int32)
    idx_w = jnp.floor(jnp.arange(out_w) * (ww / out_w)).astype(jnp.int32)
    return mask_bool[:, idx_h][:, :, idx_w]


# ----------------------------------------------------------------------------
# CVTSegmBackbone.forward equivalent
# ----------------------------------------------------------------------------
def cvt_segm_backbone_forward(cp, template_tensors, template_mask, search_tensors,
                              search_mask, template_seg_list):
    nt, c, h, w = template_tensors.shape
    ns = search_tensors.shape[0]

    if ns == nt:
        template = template_tensors
        dynamic_template = template_tensors
        template_m = template_mask
        dynamic_template_m = template_mask
        tseg = template_seg_list if template_seg_list.ndim == 4 else template_seg_list[:, None]
        dtseg = tseg
    else:
        tt = template_tensors.reshape(ns, -1, c, h, w)
        tm = template_mask.reshape(ns, -1, h, w)
        template, dynamic_template = tt[:, 0], tt[:, 1]
        template_m, dynamic_template_m = tm[:, 0], tm[:, 1]
        tseg, dtseg = template_seg_list[:, 0], template_seg_list[:, 1]

    zs, dzs, xs = mixformer_body(template, dynamic_template, search_tensors, tseg, dtseg, cp)
    zs, dzs, xs = {"0": zs}, {"0": dzs}, {"0": xs}

    def pack(feats, mask):
        out = {}
        for name, f in feats.items():
            fh, fw = f.shape[-2], f.shape[-1]
            out[name] = (f, interp_mask_nearest(mask, fh, fw))    # NestedTensor ~ (tensors, mask)
        return out

    return pack(zs, template_m), pack(dzs, dynamic_template_m), pack(xs, search_mask)


# ----------------------------------------------------------------------------
# parameters
# ----------------------------------------------------------------------------
def init_params(key, cin=3, dim=384, heads=6, mlp_ratio=4, k=PATCH_K):
    keys = jax.random.split(key, 10)
    s = 0.02
    return {
        "heads": heads,
        "patch_w": jax.random.normal(keys[0], (dim, cin, k, k), jnp.float32) * s,
        "patch_b": jnp.zeros((dim,), jnp.float32),
        "seg_w": jax.random.normal(keys[1], (dim, 1, k, k), jnp.float32) * s,
        "seg_b": jnp.zeros((dim,), jnp.float32),
        "lne_g": jnp.ones((dim,), jnp.float32), "lne_b": jnp.zeros((dim,), jnp.float32),
        "ln1_g": jnp.ones((dim,), jnp.float32), "ln1_b": jnp.zeros((dim,), jnp.float32),
        "ln2_g": jnp.ones((dim,), jnp.float32), "ln2_b": jnp.zeros((dim,), jnp.float32),
        "wq": jax.random.normal(keys[2], (dim, dim), jnp.float32) * s,
        "bq": jnp.zeros((dim,), jnp.float32),
        "wk": jax.random.normal(keys[3], (dim, dim), jnp.float32) * s,
        "bk": jnp.zeros((dim,), jnp.float32),
        "wv": jax.random.normal(keys[4], (dim, dim), jnp.float32) * s,
        "bv": jnp.zeros((dim,), jnp.float32),
        "wo": jax.random.normal(keys[5], (dim, dim), jnp.float32) * s,
        "bo": jnp.zeros((dim,), jnp.float32),
        "w1": jax.random.normal(keys[6], (dim, dim * mlp_ratio), jnp.float32) * s,
        "b1": jnp.zeros((dim * mlp_ratio,), jnp.float32),
        "w2": jax.random.normal(keys[7], (dim * mlp_ratio, dim), jnp.float32) * s,
        "b2": jnp.zeros((dim,), jnp.float32),
    }


def prepare_params(p):
    """One-time weight prep: fused RGB+seg conv weight (channel concat, im2col NHWC order,
    single K pad 196->256), folded biases, QKV concat, bf16 casts, bias rows."""
    k = PATCH_K
    dim = p["patch_w"].shape[0]

    w_comb = jnp.concatenate([p["patch_w"], p["seg_w"]], axis=1)        # (D, 4, k, k)
    cin = w_comb.shape[1]
    kdim = k * k * cin
    kpad = _round_up(kdim, 128)
    # flatten in (i, j, c) order to match the NHWC im2col slab order: (i*k + j)*cin + c
    w2 = jnp.transpose(w_comb, (2, 3, 1, 0)).reshape(kdim, dim)
    w2 = jnp.pad(w2, ((0, kpad - kdim), (0, 0))).astype(jnp.bfloat16)

    def row(v):
        return v.reshape(1, -1).astype(jnp.float32)

    return {
        "heads": p["heads"],
        "emb_w": w2,
        "emb_b_full": row(p["patch_b"] + p["seg_b"]),   # template path: RGB conv + seg conv
        "emb_b_rgb": row(p["patch_b"]),                 # search path: RGB conv only
        "lne_g": row(p["lne_g"]), "lne_b": row(p["lne_b"]),
        "ln1_g": row(p["ln1_g"]), "ln1_b": row(p["ln1_b"]),
        "ln2_g": row(p["ln2_g"]), "ln2_b": row(p["ln2_b"]),
        "wqkv": jnp.concatenate([p["wq"], p["wk"], p["wv"]], axis=1).astype(jnp.bfloat16),
        "bqkv": jnp.concatenate([p["bq"], p["bk"], p["bv"]]).reshape(1, -1).astype(jnp.float32),
        "wo": p["wo"].astype(jnp.bfloat16), "bo": row(p["bo"]),
        "w1": p["w1"].astype(jnp.bfloat16), "b1": row(p["b1"]),
        "w2": p["w2"].astype(jnp.bfloat16), "b2": row(p["b2"]),
    }


if __name__ == "__main__":
    key = jax.random.PRNGKey(0)
    k_p, k_t, k_s, k_seg, k_mt, k_ms = jax.random.split(key, 6)

    # Small shapes: Nt == Ns == 2, RGB, 16x16 template and search (stride-4 -> 4x4 features).
    N, C, H, W = 2, 3, 16, 16
    params = init_params(k_p)
    cp = prepare_params(params)

    template = jax.random.normal(k_t, (N, C, H, W), jnp.float32)
    search = jax.random.normal(k_s, (N, C, H, W), jnp.float32)
    template_seg = (jax.random.uniform(k_seg, (N, H, W)) > 0.5).astype(jnp.float32)
    template_mask = jax.random.bernoulli(k_mt, 0.2, (N, H, W))
    search_mask = jax.random.bernoulli(k_ms, 0.2, (N, H, W))

    t_out, dt_out, s_out = cvt_segm_backbone_forward(
        cp, template, template_mask, search, search_mask, template_seg
    )

    for out in (t_out, dt_out, s_out):
        feat, mask = out["0"]
        jax.block_until_ready(feat)
        jax.block_until_ready(mask)
        assert feat.shape == (N, 384, 4, 4), feat.shape
        assert mask.shape == (N, 4, 4) and mask.dtype == jnp.bool_, (mask.shape, mask.dtype)
        assert bool(jnp.all(jnp.isfinite(feat)))

    print("KERNEL_OK")
</pallas_src>

<mosaic_0001>
module attributes {stable_mosaic.version = 11 : i64} {
  func.func @_embed_ln_kernel(%arg0: i32, %arg1: memref<32x256xbf16, #tpu.memory_space<vmem>>, %arg2: memref<256x384xbf16, #tpu.memory_space<vmem>>, %arg3: memref<1x384xf32, #tpu.memory_space<vmem>>, %arg4: memref<1x384xf32, #tpu.memory_space<vmem>>, %arg5: memref<1x384xf32, #tpu.memory_space<vmem>>, %arg6: memref<32x384xbf16, #tpu.memory_space<vmem>>) attributes {dimension_semantics = [#tpu.dimension_semantics<parallel>], iteration_bounds = array<i64: 1>, scalar_prefetch = 0 : i64, scratch_operands = 0 : i64, tpu.core_type = #tpu.core_type<tc>, window_params = [{transform_indices = @transform_0, window_bounds = array<i64: 32, 256>}, {pipeline_mode = #tpu.pipeline_mode<synchronous>, transform_indices = @transform_1, window_bounds = array<i64: 256, 384>}, {pipeline_mode = #tpu.pipeline_mode<synchronous>, transform_indices = @transform_2, window_bounds = array<i64: 1, 384>}, {pipeline_mode = #tpu.pipeline_mode<synchronous>, transform_indices = @transform_3, window_bounds = array<i64: 1, 384>}, {pipeline_mode = #tpu.pipeline_mode<synchronous>, transform_indices = @transform_4, window_bounds = array<i64: 1, 384>}, {transform_indices = @transform_5, window_bounds = array<i64: 32, 384>}]} {
    %c0 = arith.constant 0 : index
    %c0_0 = arith.constant 0 : index
    %0 = vector.load %arg1[%c0, %c0_0] : memref<32x256xbf16, #tpu.memory_space<vmem>>, vector<32x256xbf16>
    %c0_1 = arith.constant 0 : index
    %c0_2 = arith.constant 0 : index
    %1 = vector.load %arg2[%c0_1, %c0_2] : memref<256x384xbf16, #tpu.memory_space<vmem>>, vector<256x384xbf16>
    %cst = arith.constant dense<0.000000e+00> : vector<32x384xf32>
    %2 = tpu.matmul %0, %1, %cst {dimension_numbers = #tpu.dot_dimension_numbers<[1], [0], [0], [1], [0, 0, 1, 1], [], []>} : vector<32x256xbf16>, vector<256x384xbf16>, vector<32x384xf32> -> vector<32x384xf32>
    %c0_3 = arith.constant 0 : index
    %c0_4 = arith.constant 0 : index
    %3 = vector.load %arg3[%c0_3, %c0_4] : memref<1x384xf32, #tpu.memory_space<vmem>>, vector<1x384xf32>
    %4 = vector.broadcast %3 : vector<1x384xf32> to vector<32x384xf32>
    %5 = arith.addf %2, %4 : vector<32x384xf32>
    %c0_5 = arith.constant 0 : index
    %c0_6 = arith.constant 0 : index
    %6 = vector.load %arg4[%c0_5, %c0_6] : memref<1x384xf32, #tpu.memory_space<vmem>>, vector<1x384xf32>
    %c0_7 = arith.constant 0 : index
    %c0_8 = arith.constant 0 : index
    %7 = vector.load %arg5[%c0_7, %c0_8] : memref<1x384xf32, #tpu.memory_space<vmem>>, vector<1x384xf32>
    %cst_9 = arith.constant dense<0.000000e+00> : vector<32xf32>
    %8 = vector.multi_reduction <add>, %5, %cst_9 [1] : vector<32x384xf32> to vector<32xf32>
    %9 = vector.shape_cast %8 : vector<32xf32> to vector<32x1xf32>
    %cst_10 = arith.constant 3.840000e+02 : f32
    %10 = vector.broadcast %cst_10 : f32 to vector<32x1xf32>
    %11 = arith.divf %9, %10 : vector<32x1xf32>
    %12 = vector.broadcast %11 : vector<32x1xf32> to vector<32x384xf32>
    %13 = arith.subf %5, %12 : vector<32x384xf32>
    %14 = arith.mulf %13, %13 : vector<32x384xf32>
    %cst_11 = arith.constant dense<0.000000e+00> : vector<32xf32>
    %15 = vector.multi_reduction <add>, %14, %cst_11 [1] : vector<32x384xf32> to vector<32xf32>
    %16 = vector.shape_cast %15 : vector<32xf32> to vector<32x1xf32>
    %cst_12 = arith.constant 3.840000e+02 : f32
    %17 = vector.broadcast %cst_12 : f32 to vector<32x1xf32>
    %18 = arith.divf %16, %17 : vector<32x1xf32>
    %19 = vector.broadcast %11 : vector<32x1xf32> to vector<32x384xf32>
    %20 = arith.subf %5, %19 : vector<32x384xf32>
    %cst_13 = arith.constant 9.99999974E-6 : f32
    %21 = vector.broadcast %cst_13 : f32 to vector<32x1xf32>
    %22 = arith.addf %18, %21 : vector<32x1xf32>
    %23 = math.rsqrt %22 : vector<32x1xf32>
    %24 = vector.broadcast %23 : vector<32x1xf32> to vector<32x384xf32>
    %25 = arith.mulf %20, %24 : vector<32x384xf32>
    %26 = vector.broadcast %6 : vector<1x384xf32> to vector<32x384xf32>
    %27 = arith.mulf %25, %26 : vector<32x384xf32>
    %28 = vector.broadcast %7 : vector<1x384xf32> to vector<32x384xf32>
    %29 = arith.addf %27, %28 : vector<32x384xf32>
    %30 = arith.truncf %29 : vector<32x384xf32> to vector<32x384xbf16>
    %c0_14 = arith.constant 0 : index
    %c0_15 = arith.constant 0 : index
    %31 = vector.load %arg6[%c0_14, %c0_15] : memref<32x384xbf16, #tpu.memory_space<vmem>>, vector<32x384xbf16>
    tpu.vector_store %arg6[%c0_14, %c0_15], %30 {strides = array<i32>} : memref<32x384xbf16, #tpu.memory_space<vmem>>, vector<32x384xbf16>,
    return
  }
  func.func @transform_0(%arg0: i32) -> (i32, i32) {
    %c0_i32 = arith.constant 0 : i32
    %c0_i32_0 = arith.constant 0 : i32
    return %arg0, %c0_i32 : i32, i32
  }
  func.func @transform_1(%arg0: i32) -> (i32, i32) {
    %c0_i32 = arith.constant 0 : i32
    %c0_i32_0 = arith.constant 0 : i32
    %c0_i32_1 = arith.constant 0 : i32
    return %c0_i32, %c0_i32_0 : i32, i32
  }
  func.func @transform_2(%arg0: i32) -> (i32, i32) {
    %c0_i32 = arith.constant 0 : i32
    %c0_i32_0 = arith.constant 0 : i32
    %c0_i32_1 = arith.constant 0 : i32
    return %c0_i32, %c0_i32_0 : i32, i32
  }
  func.func @transform_3(%arg0: i32) -> (i32, i32) {
    %c0_i32 = arith.constant 0 : i32
    %c0_i32_0 = arith.constant 0 : i32
    %c0_i32_1 = arith.constant 0 : i32
    return %c0_i32, %c0_i32_0 : i32, i32
  }
  func.func @transform_4(%arg0: i32) -> (i32, i32) {
    %c0_i32 = arith.constant 0 : i32
    %c0_i32_0 = arith.constant 0 : i32
    %c0_i32_1 = arith.constant 0 : i32
    return %c0_i32, %c0_i32_0 : i32, i32
  }
  func.func @transform_5(%arg0: i32) -> (i32, i32) {
    %c0_i32 = arith.constant 0 : i32
    %c0_i32_0 = arith.constant 0 : i32
    return %arg0, %c0_i32 : i32, i32
  }
}

</mosaic_0001>

<bundles_post_ra>
// kernel: tpu_custom_call.1
= control target key start
LH: loop header
LB: loop body
LE: loop exit
PB: predicated region body
PF: predicated region fallthrough
CT: control target
= control target key end

     0   :  { %10 = vsyncpa [#allocation3], 0  ;;  %s1138_s0 = inlined_call_operand.hbm [shape: bf16[32,256], index: 0, kind: input, shape index: {}]   ;;  %s1139_s1 = inlined_call_operand.hbm [shape: bf16[256,384], index: 1, kind: input, shape index: {}]   ;;  %s1140_s2 = inlined_call_operand.vmem [shape: f32[1,384], index: 2, kind: input, shape index: {}]   ;;  %s1141_s3 = inlined_call_operand.vmem [shape: f32[1,384], index: 3, kind: input, shape index: {}]   ;;  %s1142_s4 = inlined_call_operand.vmem [shape: f32[1,384], index: 4, kind: input, shape index: {}]   ;;  %s1143_s5 = inlined_call_operand.hbm [shape: bf16[32,384], index: 5, kind: output, shape index: {}]  }
   0x1   :  { %11 = vsyncpa [#allocation6], 0 }
   0x2   :  { %12 = vsyncpa [#allocation4], 0  ;;  %s975_s18 = smov [#allocation2]   ;;  %s903_s22 = scalar_lea.hbm %s1138_s0, 512 }
   0x3   :  { %s18_s19 = sshll.u32 %s975_s18, 4  ;;  %p904_p0 = scmp.ne.s32.totalorder %s1138_s0, %s903_s22  ;;  %s19_s19 = int_to_ptr.vmem [resolvable:$true] %s18_s19 }
   0x4   :  { %p907_p1 = scmp.lt.u32.totalorder %s903_s22, %s1138_s0 }
   0x6   :  { %p909_p2 = pnand %p907_p1, %p904_p0 }
   0x8   :  { %912 = shalt.err (!%p909_p2)
}
   0x9   :  { %s913_s27 = scalar_lea.vmem %s19_s19, 512  ;;  %p918_p4 = scmp.lt.s32.totalorder %s19_s19, %s19_s19 }
   0xa   :  { %p914_p3 = scmp.ne.s32.totalorder %s19_s19, %s913_s27  ;;  %p919_p5 = scmp.lt.s32.totalorder %s913_s27, %s913_s27 }
   0xc   :  { %p920_p6 = por %p919_p5, %p918_p4 }
   0xe   :  { %p921_p7 = pnand %p920_p6, %p914_p3 }
  0x10   :  { %924 = shalt.err (!%p921_p7)
}
  0x11   :  { %s976_s28 = smov 128   ;;  %s977_s29 = smov 8  }
  0x12   :  { %24 = dma.hbm_to_vmem [thread:$0]  %s1138_s0, 512, %s19_s19, [#allocation3], %s976_s28, %s976_s28, %s977_s29  }
  0x13   :  { %s978_s7 = smov [#allocation5]   ;;  %s925_s11 = scalar_lea.hbm %s1139_s1, 6144 }
  0x14   :  { %s30_s8 = sshll.u32 %s978_s7, 4  ;;  %p926_p8 = scmp.ne.s32.totalorder %s1139_s1, %s925_s11  ;;  %s31_s8 = int_to_ptr.vmem [resolvable:$true] %s30_s8 }
  0x15   :  { %p929_p9 = scmp.lt.u32.totalorder %s925_s11, %s1139_s1 }
  0x17   :  { %p931_p10 = pnand %p929_p9, %p926_p8 }
  0x19   :  { %934 = shalt.err (!%p931_p10)
}
  0x1a   :  { %s935_s16 = scalar_lea.vmem %s31_s8, 6144  ;;  %p940_p12 = scmp.lt.s32.totalorder %s31_s8, %s31_s8 }
  0x1b   :  { %p936_p11 = scmp.ne.s32.totalorder %s31_s8, %s935_s16  ;;  %p941_p13 = scmp.lt.s32.totalorder %s935_s16, %s935_s16 }
  0x1d   :  { %p942_p0 = por %p941_p13, %p940_p12 }
  0x1f   :  { %p943_p1 = pnand %p942_p0, %p936_p11 }
  0x21   :  { %946 = shalt.err (!%p943_p1)
}
  0x22   :  { %s979_s0 = smov 192   ;;  %s980_s17 = smov 12  }
  0x23   :  { %36 = dma.hbm_to_vmem [thread:$0]  %s1139_s1, 6144, %s31_s8, [#allocation6], %s979_s0, %s979_s0, %s980_s17  }
  0x24   :  { %969 = dma.done.wait [#allocation3], 512  }
  0x25   :  { %970 = vsyncadd [#allocation3], 4294966784 }
  0x26   :  { %971 = dma.done.wait [#allocation6], 6144  }
  0x27   :  { %972 = vsyncadd [#allocation6], 4294961152  ;;  %v825_v0 = vld [vmem:[#allocation5 + $0x4] ss:$12 sps:$4 sm:$0xff]   ;;  %v827_v1 = vld [vmem:[#allocation5] ss:$12 sps:$4 sm:$0xff]   ;;  %v120_v58 = vlaneseq }
  0x28   :  { %411 = vmatprep.subr.bf16.mxu0 %v825_v0  ;;  %v828_v2 = vld [vmem:[#allocation5 + $0x1c] ss:$12 sps:$4 sm:$0xff]   ;;  %v830_v3 = vld [vmem:[#allocation5 + $0x18] ss:$12 sps:$4 sm:$0xff]   ;;  %v831_v4 = vld [vmem:[#allocation5 + $0x34] ss:$12 sps:$4 sm:$0xff]  }
  0x29   :  { %412 = vmatpush1.bf16.msra.mxu0 %v827_v1  ;;  %v833_v5 = vld [vmem:[#allocation5 + $0x30] ss:$12 sps:$4 sm:$0xff]   ;;  %v834_v6 = vld [vmem:[#allocation5 + $0x4c] ss:$12 sps:$4 sm:$0xff]   ;;  %v836_v7 = vld [vmem:[#allocation5 + $0x48] ss:$12 sps:$4 sm:$0xff]  }
  0x2a   :  { %413 = vmatprep.subr.bf16.mxu0 %v828_v2  ;;  %v837_v8 = vld [vmem:[#allocation5 + $0x64] ss:$12 sps:$4 sm:$0xff]   ;;  %v849_v9 = vld [vmem:[#allocation5 + $0xc8] ss:$12 sps:$4 sm:$0xff]   ;;  %v839_v11 = vld [vmem:[#allocation5 + $0x60] ss:$12 sps:$4 sm:$0xff]  }
  0x2b   :  { %v850_v10 = vld [vmem:[#allocation5 + $0x8] ss:$12 sps:$4 sm:$0xff]   ;;  %790 = vmatprep.subr.bf16.mxu1 %v849_v9  ;;  %v854_v12 = vld [vmem:[#allocation5 + $0xe0] ss:$12 sps:$4 sm:$0xff]   ;;  %v842_v15 = vld [vmem:[#allocation5 + $0x78] ss:$12 sps:$4 sm:$0xff]  }
  0x2c   :  { %791 = vmatpush3.bf16.msra.mxu1 %v850_v10  ;;  %v855_v13 = vld [vmem:[#allocation5 + $0x20] ss:$12 sps:$4 sm:$0xff]   ;;  %v840_v14 = vld [vmem:[#allocation5 + $0x7c] ss:$12 sps:$4 sm:$0xff]   ;;  %v859_v16 = vld [vmem:[#allocation5 + $0xf8] ss:$12 sps:$4 sm:$0xff]  }
  0x2d   :  { %414 = vmatpush1.bf16.msra.mxu0 %v830_v3  ;;  %792 = vmatprep.subr.bf16.mxu1 %v854_v12  ;;  %v860_v17 = vld [vmem:[#allocation5 + $0x38] ss:$12 sps:$4 sm:$0xff]   ;;  %v843_v18 = vld [vmem:[#allocation5 + $0x94] ss:$12 sps:$4 sm:$0xff]   ;;  %v864_v19 = vld [vmem:[#allocation5 + $0x110] ss:$12 sps:$4 sm:$0xff]  }
  0x2e   :  { %415 = vmatprep.subr.bf16.mxu0 %v831_v4  ;;  %v865_v20 = vld [vmem:[#allocation5 + $0x50] ss:$12 sps:$4 sm:$0xff]   ;;  %v846_v22 = vld [vmem:[#allocation5 + $0xac] ss:$12 sps:$4 sm:$0xff]   ;;  %v869_v23 = vld [vmem:[#allocation5 + $0x128] ss:$12 sps:$4 sm:$0xff]  }
  0x2f   :  { %v845_v21 = vld [vmem:[#allocation5 + $0x90] ss:$12 sps:$4 sm:$0xff]   ;;  %v848_v24 = vld [vmem:[#allocation5 + $0xa8] ss:$12 sps:$4 sm:$0xff]   ;;  %v874_v27 = vld [vmem:[#allocation5 + $0x140] ss:$12 sps:$4 sm:$0xff]  }
  0x30   :  { %793 = vmatpush3.bf16.msra.mxu1 %v855_v13  ;;  %v870_v25 = vld [vmem:[#allocation5 + $0x68] ss:$12 sps:$4 sm:$0xff]   ;;  %v851_v26 = vld [vmem:[#allocation5 + $0xc4] ss:$12 sps:$4 sm:$0xff]   ;;  %v853_v28 = vld [vmem:[#allocation5 + $0xc0] ss:$12 sps:$4 sm:$0xff]  }
  0x31   :  { %416 = vmatpush1.bf16.msra.mxu0 %v833_v5  ;;  %794 = vmatprep.subr.bf16.mxu1 %v859_v16  ;;  %v875_v29 = vld [vmem:[#allocation5 + $0x80] ss:$12 sps:$4 sm:$0xff]   ;;  %v879_v30 = vld [vmem:[#allocation5 + $0x158] ss:$12 sps:$4 sm:$0xff]   ;;  %v856_v31 = vld [vmem:[#allocation5 + $0xdc] ss:$12 sps:$4 sm:$0xff]  }
  0x32   :  { %417 = vmatprep.subr.bf16.mxu0 %v834_v6  ;;  %v858_v32 = vld [vmem:[#allocation5 + $0xd8] ss:$12 sps:$4 sm:$0xff]   ;;  %v884_v34 = vld [vmem:[#allocation5 + $0x170] ss:$12 sps:$4 sm:$0xff]   ;;  %v861_v35 = vld [vmem:[#allocation5 + $0xf4] ss:$12 sps:$4 sm:$0xff]  }
  0x33   :  { %v880_v33 = vld [vmem:[#allocation5 + $0x98] ss:$12 sps:$4 sm:$0xff]   ;;  %v885_v36 = vld [vmem:[#allocation5 + $0xb0] ss:$12 sps:$4 sm:$0xff]   ;;  %v888_v40 = vld [vmem:[#allocation2] ss:$8 sps:$4 sm:$0xff]  }
  0x34   :  { %795 = vmatpush3.bf16.msra.mxu1 %v860_v17  ;;  %v890_v37 = vld [vmem:[#allocation2 + $0x4] ss:$8 sps:$4 sm:$0xff]   ;;  %v863_v38 = vld [vmem:[#allocation5 + $0xf0] ss:$12 sps:$4 sm:$0xff]   ;;  %v868_v42 = vld [vmem:[#allocation5 + $0x108] ss:$12 sps:$4 sm:$0xff]  }
  0x35   :  { %418 = vmatpush1.bf16.msra.mxu0 %v836_v7  ;;  %796 = vmatprep.subr.bf16.mxu1 %v864_v19  ;;  %v866_v39 = vld [vmem:[#allocation5 + $0x10c] ss:$12 sps:$4 sm:$0xff]   ;;  %v892_v41 = vld [vmem:[#allocation2 + $0x14] ss:$8 sps:$4 sm:$0xff]   ;;  %v871_v43 = vld [vmem:[#allocation5 + $0x124] ss:$12 sps:$4 sm:$0xff]  }
  0x36   :  { %419 = vmatprep.subr.bf16.mxu0 %v837_v8  ;;  %496 = vmatprep.mubr.bf16.mxu1 %v890_v37  ;;  %v873_v44 = vld [vmem:[#allocation5 + $0x120] ss:$12 sps:$4 sm:$0xff]   ;;  %v876_v45 = vld [vmem:[#allocation5 + $0x13c] ss:$12 sps:$4 sm:$0xff]   ;;  %v894_v46 = vld [vmem:[#allocation2 + $0x10] ss:$8 sps:$4 sm:$0xff]  }
  0x37   :  { %443 = vmatprep.mubr.bf16.mxu0 %v890_v37  ;;  %v878_v47 = vld [vmem:[#allocation5 + $0x138] ss:$12 sps:$4 sm:$0xff]   ;;  %v881_v48 = vld [vmem:[#allocation5 + $0x154] ss:$12 sps:$4 sm:$0xff]   ;;  %v883_v49 = vld [vmem:[#allocation5 + $0x150] ss:$12 sps:$4 sm:$0xff]  }
  0x38   :  { %797 = vmatpush3.bf16.msra.mxu1 %v865_v20  ;;  %v886_v50 = vld [vmem:[#allocation5 + $0x16c] ss:$12 sps:$4 sm:$0xff]   ;;  %v891_v51 = vld [vmem:[#allocation5 + $0x168] ss:$12 sps:$4 sm:$0xff]   ;;  %v121_v61 = vshrl.u32 %v120_v58, 7 }
  0x39   :  { %420 = vmatpush1.bf16.msra.mxu0 %v839_v11  ;;  %798 = vmatprep.subr.bf16.mxu1 %v869_v23  ;;  %v118_v3 = vld [vmem:[%s1140_s2] sm:$0x7] }
  0x3a   :  { %421 = vmatprep.subr.bf16.mxu0 %v840_v14  ;;  %v1039_v2 = vsub.s32 0, %v121_v61  ;;  %v1044_v4 = vsub.s32 2, %v121_v61  ;;  %v1046_v5 = vsub.s32 1, %v121_v61 }
  0x3c   :  { %799 = vmatpush3.bf16.msra.mxu1 %v870_v25  ;;  %v123_v6 = vrot.slane %v118_v3, %v1039_v2  ;;  %v131_v7 = vrot.slane %v118_v3, %v1044_v4  ;;  %v127_v8 = vrot.slane %v118_v3, %v1046_v5 }
  0x3d   :  { %422 = vmatpush1.bf16.msra.mxu0 %v842_v15  ;;  %800 = vmatprep.subr.bf16.mxu1 %v874_v27 }
  0x3e   :  { %423 = vmatprep.subr.bf16.mxu0 %v843_v18 }
  0x40   :  { %801 = vmatpush3.bf16.msra.mxu1 %v875_v29 }
  0x41   :  { %424 = vmatpush1.bf16.msra.mxu0 %v845_v21  ;;  %802 = vmatprep.subr.bf16.mxu1 %v879_v30 }
  0x42   :  { %425 = vmatprep.subr.bf16.mxu0 %v846_v22 }
  0x44   :  { %803 = vmatpush3.bf16.msra.mxu1 %v880_v33 }
  0x45   :  { %426 = vmatpush1.bf16.msra.mxu0 %v848_v24  ;;  %804 = vmatprep.subr.bf16.mxu1 %v884_v34 }
  0x46   :  { %427 = vmatprep.subr.bf16.mxu0 %v851_v26 }
  0x48   :  { %805 = vmatpush3.bf16.msra.mxu1 %v885_v36 }
  0x49   :  { %428 = vmatpush1.bf16.msra.mxu0 %v853_v28 }
  0x4a   :  { %429 = vmatprep.subr.bf16.mxu0 %v856_v31 }
  0x4b   :  { %497 = vmatmul.mubr.bf16.vlgmr.msra.gmra.mrb[0].mxu1 %v888_v40 }
  0x4c   :  { %504 = vmatprep.mubr.bf16.mxu1 %v892_v41 }
  0x4d   :  { %430 = vmatpush1.bf16.msra.mxu0 %v858_v32 }
  0x4e   :  { %431 = vmatprep.subr.bf16.mxu0 %v861_v35 }
  0x51   :  { %432 = vmatpush1.bf16.msra.mxu0 %v863_v38 }
  0x52   :  { %433 = vmatprep.subr.bf16.mxu0 %v866_v39 }
  0x53   :  { %505 = vmatmul.mubr.bf16.gmra.mrb[4].mxu1 %v894_v46 }
  0x55   :  { %434 = vmatpush1.bf16.msra.mxu0 %v868_v42 }
  0x56   :  { %435 = vmatprep.subr.bf16.mxu0 %v871_v43 }
  0x59   :  { %436 = vmatpush1.bf16.msra.mxu0 %v873_v44 }
  0x5a   :  { %437 = vmatprep.subr.bf16.mxu0 %v876_v45 }
  0x5d   :  { %438 = vmatpush1.bf16.msra.mxu0 %v878_v47 }
  0x5e   :  { %439 = vmatprep.subr.bf16.mxu0 %v881_v48 }
  0x61   :  { %440 = vmatpush1.bf16.msra.mxu0 %v883_v49 }
  0x62   :  { %441 = vmatprep.subr.bf16.mxu0 %v886_v50 }
  0x65   :  { %442 = vmatpush1.bf16.msra.mxu0 %v891_v51 }
  0x68   :  { %444 = vmatmul.mubr.bf16.vlgmr.msra.gmra.mrb[0].mxu0 %v888_v40 }
  0x69   :  { %453 = vmatprep.mubr.bf16.mxu0 %v892_v41 }
  0x70   :  { %454 = vmatmul.mubr.bf16.gmra.mrb[4].mxu0 %v894_v46 }
 0x11e   :  { %v806_v52 = vpop.f32.mrb[0].mxu1 }
 0x11f   :  { %v807_v53 = vpop.f32.mrb[1].mxu1 }
 0x120   :  { %v808_v54 = vadd.f32 %v807_v53, %v806_v52  ;;  %v809_v55 = vpop.f32.mrb[2].mxu1 }
 0x121   :  { %v810_v56 = vpop.f32.mrb[3].mxu1 }
 0x122   :  { %v811_v57 = vadd.f32 %v810_v56, %v809_v55  ;;  %v499_v14 = vadd.f32 %v808_v54, %v131_v7 }
 0x124   :  { %v502_v21 = vadd.f32 %v811_v57, %v131_v7 }
 0x126   :  { %v812_v59 = vpop.f32.mrb[4].mxu1 }
 0x127   :  { %v813_v60 = vpop.f32.mrb[5].mxu1 }
 0x128   :  { %v814_v62 = vadd.f32 %v813_v60, %v812_v59  ;;  %v815_v63 = vpop.f32.mrb[6].mxu1 }
 0x129   :  { %v816_v0 = vpop.f32.mrb[7].mxu1 }
 0x12a   :  { %v817_v1 = vadd.f32 %v816_v0, %v815_v63  ;;  %v507_v28 = vadd.f32 %v814_v62, %v131_v7 }
 0x12c   :  { %v510_v35 = vadd.f32 %v817_v1, %v131_v7 }
 0x13b   :  { %v445_v9 = vpop.f32.mrb[0].mxu0 }
 0x13c   :  { %v446_v10 = vadd.f32 %v445_v9, %v123_v6  ;;  %v447_v11 = vpop.f32.mrb[1].mxu0 }
 0x13d   :  { %v448_v12 = vadd.f32 %v447_v11, %v127_v8  ;;  %v449_v13 = vpop.f32.mrb[2].mxu0 }
 0x13e   :  { %v450_v15 = vadd.f32 %v449_v13, %v123_v6  ;;  %v451_v16 = vpop.f32.mrb[3].mxu0 }
 0x13f   :  { %v452_v17 = vadd.f32 %v451_v16, %v127_v8  ;;  %v515_v18 = vadd.f32 %v448_v12, %v446_v10 }
 0x141   :  { %v519_v19 = vadd.f32 %v452_v17, %v450_v15  ;;  %v516_v20 = vadd.f32 %v515_v18, %v499_v14 }
 0x143   :  { %v455_v22 = vpop.f32.mrb[4].mxu0  ;;  %517 = vadd.xlane.f32.xlu0 %v516_v20  ;;  %v520_v27 = vadd.f32 %v519_v19, %v502_v21 }
 0x144   :  { %v456_v23 = vadd.f32 %v455_v22, %v123_v6  ;;  %v457_v24 = vpop.f32.mrb[5].mxu0 }
 0x145   :  { %v458_v25 = vadd.f32 %v457_v24, %v127_v8  ;;  %v459_v26 = vpop.f32.mrb[6].mxu0  ;;  %v513_v24 = vld [vmem:[%s1141_s3] sm:$0x7]  ;;  %s981_s3 = smov [#allocation7]  }
 0x146   :  { %v460_v29 = vadd.f32 %v459_v26, %v123_v6  ;;  %v461_v30 = vpop.f32.mrb[7].mxu0 }
 0x147   :  { %v462_v31 = vadd.f32 %v461_v30, %v127_v8  ;;  %521 = vadd.xlane.f32.xlu0 %v520_v27  ;;  %v523_v32 = vadd.f32 %v458_v25, %v456_v23  ;;  %v514_v27 = vld [vmem:[%s1142_s4] sm:$0x7]  ;;  %v612_v30 = vrot.slane %v513_v24, %v1044_v4  ;;  %s709_s4 = sshll.u32 %s981_s3, 4  ;;  %s710_s4 = int_to_ptr.vmem [resolvable:$true] %s709_s4 }
 0x148   :  { %s947_s24 = scalar_lea.vmem %s710_s4, 768  ;;  %p952_p3 = scmp.lt.s32.totalorder %s710_s4, %s710_s4 }
 0x149   :  { %v527_v33 = vadd.f32 %v462_v31, %v460_v29  ;;  %v524_v34 = vadd.f32 %v523_v32, %v507_v28  ;;  %p948_p2 = scmp.ne.s32.totalorder %s710_s4, %s947_s24  ;;  %p953_p4 = scmp.lt.s32.totalorder %s947_s24, %s947_s24 }
 0x14b   :  { %525 = vadd.xlane.f32.xlu1 %v524_v34  ;;  %v528_v36 = vadd.f32 %v527_v33, %v510_v35  ;;  %v632_v34 = vrot.slane %v514_v27, %v1039_v2  ;;  %p954_p5 = por %p953_p4, %p952_p3 }
 0x14d   :  { %p955_p6 = pnand %p954_p5, %p948_p2 }
 0x14f   :  { %529 = vadd.xlane.f32.xlu1 %v528_v36 }
 0x1d0   :  { %v518_v37 = vpop.xlane.xlu0 %517 }
 0x1d1   :  { %v532_v38 = vmul.f32 0.0026041667, %v518_v37 }
 0x1d3   :  { %v1051_v39 = vsub.f32 %v446_v10, %v532_v38  ;;  %v1053_v40 = vsub.f32 %v448_v12, %v532_v38  ;;  %v1055_v41 = vsub.f32 %v499_v14, %v532_v38  ;;  %v640_v38 = vrot.slane %v514_v27, %v1044_v4 }
 0x1d4   :  { %v522_v42 = vpop.xlane.xlu0 %521 }
 0x1d5   :  { %v533_v43 = vmul.f32 0.0026041667, %v522_v42  ;;  %v548_v44 = vmul.f32 %v1051_v39, %v1051_v39  ;;  %v549_v45 = vmul.f32 %v1053_v40, %v1053_v40  ;;  %v550_v46 = vmul.f32 %v1055_v41, %v1055_v41 }
 0x1d6   :  { %v636_v42 = vrot.slane %v514_v27, %v1046_v5 }
 0x1d7   :  { %v1063_v47 = vsub.f32 %v450_v15, %v533_v43  ;;  %v1065_v48 = vsub.f32 %v452_v17, %v533_v43  ;;  %v1067_v49 = vsub.f32 %v502_v21, %v533_v43  ;;  %v560_v50 = vadd.f32 %v549_v45, %v548_v44 }
 0x1d8   :  { %v526_v51 = vpop.xlane.xlu1 %525 }
 0x1d9   :  { %v534_v52 = vmul.f32 0.0026041667, %v526_v51  ;;  %v561_v53 = vadd.f32 %v560_v50, %v550_v46  ;;  %v551_v54 = vmul.f32 %v1063_v47, %v1063_v47  ;;  %v552_v55 = vmul.f32 %v1065_v48, %v1065_v48 }
 0x1da   :  { %v553_v56 = vmul.f32 %v1067_v49, %v1067_v49 }
 0x1db   :  { %v1075_v57 = vsub.f32 %v456_v23, %v534_v52  ;;  %v1077_v58 = vsub.f32 %v458_v25, %v534_v52  ;;  %v1079_v59 = vsub.f32 %v507_v28, %v534_v52  ;;  %562 = vadd.xlane.f32.xlu0 %v561_v53  ;;  %v564_v60 = vadd.f32 %v552_v55, %v551_v54 }
 0x1dc   :  { %v530_v61 = vpop.xlane.xlu1 %529 }
 0x1dd   :  { %v535_v62 = vmul.f32 0.0026041667, %v530_v61  ;;  %v565_v63 = vadd.f32 %v564_v60, %v553_v56  ;;  %v554_v0 = vmul.f32 %v1075_v57, %v1075_v57  ;;  %v555_v1 = vmul.f32 %v1077_v58, %v1077_v58 }
 0x1de   :  { %v556_v3 = vmul.f32 %v1079_v59, %v1079_v59 }
 0x1df   :  { %v1087_v6 = vsub.f32 %v460_v29, %v535_v62  ;;  %v1089_v7 = vsub.f32 %v462_v31, %v535_v62  ;;  %v1091_v8 = vsub.f32 %v510_v35, %v535_v62  ;;  %566 = vadd.xlane.f32.xlu1 %v565_v63  ;;  %v568_v9 = vadd.f32 %v555_v1, %v554_v0 }
 0x1e0   :  { %v604_v29 = vrot.slane %v513_v24, %v1039_v2  ;;  %v608_v31 = vrot.slane %v513_v24, %v1046_v5 }
 0x1e1   :  { %v569_v10 = vadd.f32 %v568_v9, %v556_v3  ;;  %v557_v11 = vmul.f32 %v1087_v6, %v1087_v6  ;;  %v558_v12 = vmul.f32 %v1089_v7, %v1089_v7  ;;  %v559_v13 = vmul.f32 %v1091_v8, %v1091_v8 }
 0x1e3   :  { %570 = vadd.xlane.f32.xlu0 %v569_v10  ;;  %v572_v14 = vadd.f32 %v558_v12, %v557_v11 }
 0x1e5   :  { %v573_v15 = vadd.f32 %v572_v14, %v559_v13 }
 0x1e7   :  { %574 = vadd.xlane.f32.xlu1 %v573_v15 }
 0x268   :  { %v563_v16 = vpop.xlane.xlu0 %562 }
 0x269   :  { %v576_v17 = vmul.f32 0.0026041667, %v563_v16 }
 0x26b   :  { %v580_v18 = vadd.f32 1e-05, %v576_v17 }
 0x26c   :  { %v567_v19 = vpop.xlane.xlu1 %566 }
 0x26d   :  { %895 = vrsqrt.f32 %v580_v18  ;;  %v577_v20 = vmul.f32 0.0026041667, %v567_v19 }
 0x26f   :  { %v581_v21 = vadd.f32 1e-05, %v577_v20 }
 0x270   :  { %v571_v22 = vpop.xlane.xlu0 %570 }
 0x271   :  { %897 = vrsqrt.f32 %v581_v21  ;;  %v578_v23 = vmul.f32 0.0026041667, %v571_v22 }
 0x273   :  { %v582_v25 = vadd.f32 1e-05, %v578_v23 }
 0x274   :  { %v575_v26 = vpop.xlane.xlu1 %574 }
 0x275   :  { %899 = vrsqrt.f32 %v582_v25  ;;  %v579_v28 = vmul.f32 0.0026041667, %v575_v26 }
 0x277   :  { %v896_v32 = vpop.eup %895  ;;  %v583_v33 = vadd.f32 1e-05, %v579_v28 }
 0x278   :  { %v588_v35 = vmul.f32 %v896_v32, %v1051_v39  ;;  %v589_v36 = vmul.f32 %v896_v32, %v1053_v40  ;;  %v590_v37 = vmul.f32 %v896_v32, %v1055_v41 }
 0x279   :  { %901 = vrsqrt.f32 %v583_v33 }
 0x27a   :  { %v616_v43 = vmul.f32 %v604_v29, %v588_v35  ;;  %v617_v44 = vmul.f32 %v608_v31, %v589_v36  ;;  %v618_v45 = vmul.f32 %v612_v30, %v590_v37 }
 0x27b   :  { %v898_v46 = vpop.eup %897 }
 0x27c   :  { %v591_v50 = vmul.f32 %v898_v46, %v1063_v47  ;;  %v592_v51 = vmul.f32 %v898_v46, %v1065_v48  ;;  %v593_v2 = vmul.f32 %v898_v46, %v1067_v49  ;;  %v644_v39 = vadd.f32 %v632_v34, %v616_v43 }
 0x27d   :  { %v645_v52 = vadd.f32 %v636_v42, %v617_v44  ;;  %v646_v40 = vadd.f32 %v640_v38, %v618_v45 }
 0x27e   :  { %v619_v53 = vmul.f32 %v604_v29, %v591_v50  ;;  %v620_v41 = vmul.f32 %v608_v31, %v592_v51  ;;  %v621_v54 = vmul.f32 %v612_v30, %v593_v2 }
 0x27f   :  { %v900_v4 = vpop.eup %899  ;;  %v782_v55 = vpack.c.bf16 %v645_v52, %v644_v39  ;;  %v783_v5 = vpack.c.bf16 %v646_v40, %v646_v40 }
 0x280   :  { %v594_v56 = vmul.f32 %v900_v4, %v1075_v57  ;;  %v595_v60 = vmul.f32 %v900_v4, %v1077_v58  ;;  %v596_v61 = vmul.f32 %v900_v4, %v1079_v59  ;;  %v647_v47 = vadd.f32 %v632_v34, %v619_v53 }
 0x281   :  { %v648_v62 = vadd.f32 %v636_v42, %v620_v41  ;;  %v649_v48 = vadd.f32 %v640_v38, %v621_v54  ;;  %696 = vst [vmem:[#allocation7] sm:$0xff] %v782_v55  ;;  %697 = vst [vmem:[#allocation7 + $0x8] sm:$0xf] %v783_v5 }
 0x282   :  { %v622_v49 = vmul.f32 %v604_v29, %v594_v56  ;;  %v623_v63 = vmul.f32 %v608_v31, %v595_v60  ;;  %v624_v0 = vmul.f32 %v612_v30, %v596_v61 }
 0x283   :  { %v902_v1 = vpop.eup %901  ;;  %v784_v3 = vpack.c.bf16 %v648_v62, %v647_v47  ;;  %v785_v9 = vpack.c.bf16 %v649_v48, %v649_v48 }
 0x284   :  { %v597_v10 = vmul.f32 %v902_v1, %v1087_v6  ;;  %v598_v11 = vmul.f32 %v902_v1, %v1089_v7  ;;  %v599_v57 = vmul.f32 %v902_v1, %v1091_v8  ;;  %v650_v58 = vadd.f32 %v632_v34, %v622_v49 }
 0x285   :  { %v651_v12 = vadd.f32 %v636_v42, %v623_v63  ;;  %v652_v59 = vadd.f32 %v640_v38, %v624_v0  ;;  %698 = vst [vmem:[#allocation7 + $0xc] sm:$0xff] %v784_v3  ;;  %699 = vst [vmem:[#allocation7 + $0x14] sm:$0xf] %v785_v9 }
 0x286   :  { %v625_v13 = vmul.f32 %v604_v29, %v597_v10  ;;  %v626_v14 = vmul.f32 %v608_v31, %v598_v11  ;;  %v627_v15 = vmul.f32 %v612_v30, %v599_v57 }
 0x287   :  { %v786_v16 = vpack.c.bf16 %v651_v12, %v650_v58  ;;  %v787_v17 = vpack.c.bf16 %v652_v59, %v652_v59 }
 0x288   :  { %v653_v18 = vadd.f32 %v632_v34, %v625_v13  ;;  %v654_v19 = vadd.f32 %v636_v42, %v626_v14  ;;  %v655_v20 = vadd.f32 %v640_v38, %v627_v15 }
 0x289   :  { %700 = vst [vmem:[#allocation7 + $0x18] sm:$0xff] %v786_v16  ;;  %701 = vst [vmem:[#allocation7 + $0x20] sm:$0xf] %v787_v17 }
 0x28a   :  { %v788_v6 = vpack.c.bf16 %v654_v19, %v653_v18  ;;  %v789_v7 = vpack.c.bf16 %v655_v20, %v655_v20 }
 0x28c   :  { %702 = vst [vmem:[#allocation7 + $0x24] sm:$0xff] %v788_v6  ;;  %703 = vst [vmem:[#allocation7 + $0x2c] sm:$0xf] %v789_v7 }
 0x28d   :  { %958 = shalt.err (!%p955_p6)
}
 0x28e   :  { %s959_s27 = scalar_lea.hbm %s1143_s5, 768 }
 0x28f   :  { %p960_p7 = scmp.ne.s32.totalorder %s1143_s5, %s959_s27  ;;  %p963_p8 = scmp.lt.u32.totalorder %s959_s27, %s1143_s5 }
 0x291   :  { %p965_p9 = pnand %p963_p8, %p960_p7 }
 0x293   :  { %968 = shalt.err (!%p965_p9)
}
 0x294   :  { %715 = dma.vmem_to_hbm [thread:$0]  %s710_s4, 768, %s1143_s5, [#allocation4], %s979_s0, %s979_s0, %s980_s17  }
 0x295   :  { %973 = dma.done.wait [#allocation4], 768  }
 0x296   :  { %974 = vsyncadd [#allocation4], 4294966528 }
 0x297   :  { %719 = vsyncpa [#allocation3], 1 }
 0x298   :  { %720 = vsyncpa [#allocation6], 1 }
 0x299   :  { %721 = vsyncpa [#allocation4], 1 }

</bundles_post_ra>
